<compile_context>
chip_gen: v5e
topology: v5e:2x2
jax: 0.10.0
libtpu: 0.0.40
codegen_flags: <defaults>
</compile_context>

<pallas_src>
import jax
import jax.numpy as jnp
from jax.experimental import pallas as pl
from jax.experimental.pallas import tpu as pltpu


# PyTorch conv3d is cross-correlation over the replication-padded volume; a one-hot
# filter tap at (kh, kw) reads x[clamp(h + kh - 1), clamp(w + kw - 1)].
_TAPS = ((0, 0), (1, 1), (2, 2), (2, 0), (0, 2))


def _make_kernel(d_tile, H, W):
    HW = H * W

    def kernel(x_ref, o_ref):
        x = x_ref[0]                                        # (d_tile, HW), lane-dense
        lane = jax.lax.broadcasted_iota(jnp.int32, (d_tile, HW), 1)
        col = lane % W
        is_row0 = lane < W                                  # h == 0
        is_rowL = lane >= HW - W                            # h == H - 1
        is_col0 = col == 0                                  # w == 0
        is_colL = col == W - 1                              # w == W - 1

        # Row shifts with replicate clamping: a lane roll by +/-W, border row kept as
        # the unshifted value (clamp(h-1)=0 at h=0, clamp(h+1)=H-1 at h=H-1).
        up = jnp.where(is_row0, x, pltpu.roll(x, W, axis=1))          # x[clamp(h-1), w]
        down = jnp.where(is_rowL, x, pltpu.roll(x, HW - W, axis=1))   # x[clamp(h+1), w]

        def left(a):                                        # a[h, clamp(w-1)]
            return jnp.where(is_col0, a, pltpu.roll(a, 1, axis=1))

        def right(a):                                       # a[h, clamp(w+1)]
            return jnp.where(is_colL, a, pltpu.roll(a, HW - 1, axis=1))

        o_ref[0, 0] = left(up)        # tap (0,0) -> x[h-1, w-1]
        o_ref[0, 1] = x               # tap (1,1) -> x[h,   w  ]
        o_ref[0, 2] = right(down)     # tap (2,2) -> x[h+1, w+1]
        o_ref[0, 3] = left(down)      # tap (2,0) -> x[h+1, w-1]
        o_ref[0, 4] = right(up)       # tap (0,2) -> x[h-1, w+1]

    return kernel


def _choose_d_tile(D):
    # Whole depth range per grid step for small volumes; chunk big volumes so the
    # (1 input + 5 output) x d_tile x HW f32 working set stays small per grid step.
    if D <= 128:
        return D
    for t in (128, 64, 32, 16, 8):
        if D % t == 0:
            return t
    return D


def propagation_prob(prob_volume):
    """prob_volume: (B, 1, D, H, W) float32 (NCDHW, like the PyTorch module)."""
    B, C, D, H, W = prob_volume.shape
    assert C == 1, "Propagation_prob's conv3d expects a single input channel"
    HW = H * W
    d_tile = _choose_d_tile(D)
    x = prob_volume.reshape(B, D, HW)          # lane-dense: merge (H, W) -> H*W lanes

    out = pl.pallas_call(
        _make_kernel(d_tile, H, W),
        out_shape=jax.ShapeDtypeStruct((B, 5, D, HW), prob_volume.dtype),
        grid_spec=pltpu.PrefetchScalarGridSpec(
            num_scalar_prefetch=0,
            grid=(B, D // d_tile),
            in_specs=[pl.BlockSpec((1, d_tile, HW), lambda b, d: (b, d, 0))],
            out_specs=pl.BlockSpec((1, 5, d_tile, HW), lambda b, d: (b, 0, d, 0)),
        ),
        compiler_params=pltpu.CompilerParams(
            dimension_semantics=("parallel", "parallel")),
    )(x)
    return out.reshape(B, 5, D, H, W)


def propagation_prob_ref(prob_volume):
    """Pure-JAX reference mirroring the PyTorch forward (replication pad + conv3d)."""
    B, _, D, H, W = prob_volume.shape
    p = jnp.pad(prob_volume, ((0, 0), (0, 0), (0, 0), (1, 1), (1, 1)), mode="edge")
    outs = [p[:, 0, :, kh:kh + H, kw:kw + W] for kh, kw in _TAPS]
    return jnp.stack(outs, axis=1)             # (B, 5, D, H, W)


if __name__ == "__main__":
    B, D, H, W = 2, 8, 16, 16
    key = jax.random.PRNGKey(0)
    logits = jax.random.normal(key, (B, 1, D, H, W), jnp.float32)
    prob_volume = jax.nn.softmax(logits, axis=2)   # probability volume over depth

    out = jax.block_until_ready(propagation_prob(prob_volume))
    ref = propagation_prob_ref(prob_volume)

    assert out.shape == (B, 5, D, H, W) and out.dtype == jnp.float32
    max_err = float(jnp.max(jnp.abs(out - ref)))
    assert max_err < 1e-6, f"kernel/reference mismatch: max abs err {max_err}"
    print("KERNEL_OK")
</pallas_src>

<mosaic_0001>
module attributes {stable_mosaic.version = 11 : i64} {
  func.func @kernel(%arg0: i32, %arg1: i32, %arg2: memref<1x8x256xf32, #tpu.memory_space<vmem>>, %arg3: memref<1x5x8x256xf32, #tpu.memory_space<vmem>>) attributes {dimension_semantics = [#tpu.dimension_semantics<parallel>, #tpu.dimension_semantics<parallel>], iteration_bounds = array<i64: 2, 1>, scalar_prefetch = 0 : i64, scratch_operands = 0 : i64, tpu.core_type = #tpu.core_type<tc>, window_params = [{transform_indices = @transform_0, window_bounds = array<i64: 1, 8, 256>}, {transform_indices = @transform_1, window_bounds = array<i64: 1, 5, 8, 256>}]} {
    %c0 = arith.constant 0 : index
    %c0_0 = arith.constant 0 : index
    %c0_1 = arith.constant 0 : index
    %0 = vector.load %arg2[%c0, %c0_0, %c0_1] : memref<1x8x256xf32, #tpu.memory_space<vmem>>, vector<1x8x256xf32>
    %1 = vector.shape_cast %0 : vector<1x8x256xf32> to vector<8x256xf32>
    %2 = tpu.iota {dimensions = array<i32: 1>} : vector<8x256xi32>
    %c16_i32 = arith.constant 16 : i32
    %c0_i32 = arith.constant 0 : i32
    %3 = arith.cmpi eq, %c16_i32, %c0_i32 : i32
    %c1_i32 = arith.constant 1 : i32
    %4 = arith.select %3, %c1_i32, %c16_i32 : i32
    %5 = vector.broadcast %4 : i32 to vector<8x256xi32>
    %6 = arith.remsi %2, %5 : vector<8x256xi32>
    %c0_i32_2 = arith.constant 0 : i32
    %7 = vector.broadcast %c0_i32_2 : i32 to vector<8x256xi32>
    %8 = arith.cmpi ne, %6, %7 : vector<8x256xi32>
    %c0_i32_3 = arith.constant 0 : i32
    %9 = vector.broadcast %c0_i32_3 : i32 to vector<8x256xi32>
    %10 = arith.cmpi slt, %6, %9 : vector<8x256xi32>
    %c0_i32_4 = arith.constant 0 : i32
    %11 = arith.cmpi slt, %4, %c0_i32_4 : i32
    %12 = vector.broadcast %11 : i1 to vector<8x256xi1>
    %13 = vector.broadcast %12 : vector<8x256xi1> to vector<8x256xi1>
    %14 = arith.xori %10, %13 : vector<8x256xi1>
    %15 = arith.andi %14, %8 : vector<8x256xi1>
    %16 = vector.broadcast %4 : i32 to vector<8x256xi32>
    %17 = arith.addi %6, %16 : vector<8x256xi32>
    %18 = arith.select %15, %17, %6 : vector<8x256xi1>, vector<8x256xi32>
    %c16_i32_5 = arith.constant 16 : i32
    %19 = vector.broadcast %c16_i32_5 : i32 to vector<8x256xi32>
    %20 = arith.cmpi slt, %2, %19 : vector<8x256xi32>
    %c240_i32 = arith.constant 240 : i32
    %21 = vector.broadcast %c240_i32 : i32 to vector<8x256xi32>
    %22 = arith.cmpi sge, %2, %21 : vector<8x256xi32>
    %c0_i32_6 = arith.constant 0 : i32
    %23 = vector.broadcast %c0_i32_6 : i32 to vector<8x256xi32>
    %24 = arith.cmpi eq, %18, %23 : vector<8x256xi32>
    %c15_i32 = arith.constant 15 : i32
    %25 = vector.broadcast %c15_i32 : i32 to vector<8x256xi32>
    %26 = arith.cmpi eq, %18, %25 : vector<8x256xi32>
    %c16_i32_7 = arith.constant 16 : i32
    %27 = tpu.dynamic_rotate %1 by %c16_i32_7 dim 1 : vector<8x256xf32>, i32 -> vector<8x256xf32>
    %28 = arith.select %20, %1, %27 : vector<8x256xi1>, vector<8x256xf32>
    %c240_i32_8 = arith.constant 240 : i32
    %29 = tpu.dynamic_rotate %1 by %c240_i32_8 dim 1 : vector<8x256xf32>, i32 -> vector<8x256xf32>
    %30 = arith.select %22, %1, %29 : vector<8x256xi1>, vector<8x256xf32>
    %c1_i32_9 = arith.constant 1 : i32
    %31 = tpu.dynamic_rotate %28 by %c1_i32_9 dim 1 : vector<8x256xf32>, i32 -> vector<8x256xf32>
    %32 = arith.select %24, %28, %31 : vector<8x256xi1>, vector<8x256xf32>
    %c0_10 = arith.constant 0 : index
    %c0_11 = arith.constant 0 : index
    %c0_12 = arith.constant 0 : index
    %c0_13 = arith.constant 0 : index
    %33 = vector.load %arg3[%c0_10, %c0_11, %c0_12, %c0_13] : memref<1x5x8x256xf32, #tpu.memory_space<vmem>>, vector<1x1x8x256xf32>
    %34 = vector.shape_cast %33 : vector<1x1x8x256xf32> to vector<8x256xf32>
    %35 = vector.shape_cast %32 : vector<8x256xf32> to vector<1x1x8x256xf32>
    tpu.vector_store %arg3[%c0_10, %c0_11, %c0_12, %c0_13], %35 {strides = array<i32>} : memref<1x5x8x256xf32, #tpu.memory_space<vmem>>, vector<1x1x8x256xf32>,
    %c0_14 = arith.constant 0 : index
    %c1 = arith.constant 1 : index
    %c0_15 = arith.constant 0 : index
    %c0_16 = arith.constant 0 : index
    %36 = vector.load %arg3[%c0_14, %c1, %c0_15, %c0_16] : memref<1x5x8x256xf32, #tpu.memory_space<vmem>>, vector<1x1x8x256xf32>
    %37 = vector.shape_cast %36 : vector<1x1x8x256xf32> to vector<8x256xf32>
    %38 = vector.shape_cast %1 : vector<8x256xf32> to vector<1x1x8x256xf32>
    tpu.vector_store %arg3[%c0_14, %c1, %c0_15, %c0_16], %38 {strides = array<i32>} : memref<1x5x8x256xf32, #tpu.memory_space<vmem>>, vector<1x1x8x256xf32>,
    %c255_i32 = arith.constant 255 : i32
    %39 = tpu.dynamic_rotate %30 by %c255_i32 dim 1 : vector<8x256xf32>, i32 -> vector<8x256xf32>
    %40 = arith.select %26, %30, %39 : vector<8x256xi1>, vector<8x256xf32>
    %c0_17 = arith.constant 0 : index
    %c2 = arith.constant 2 : index
    %c0_18 = arith.constant 0 : index
    %c0_19 = arith.constant 0 : index
    %41 = vector.load %arg3[%c0_17, %c2, %c0_18, %c0_19] : memref<1x5x8x256xf32, #tpu.memory_space<vmem>>, vector<1x1x8x256xf32>
    %42 = vector.shape_cast %41 : vector<1x1x8x256xf32> to vector<8x256xf32>
    %43 = vector.shape_cast %40 : vector<8x256xf32> to vector<1x1x8x256xf32>
    tpu.vector_store %arg3[%c0_17, %c2, %c0_18, %c0_19], %43 {strides = array<i32>} : memref<1x5x8x256xf32, #tpu.memory_space<vmem>>, vector<1x1x8x256xf32>,
    %c1_i32_20 = arith.constant 1 : i32
    %44 = tpu.dynamic_rotate %30 by %c1_i32_20 dim 1 : vector<8x256xf32>, i32 -> vector<8x256xf32>
    %45 = arith.select %24, %30, %44 : vector<8x256xi1>, vector<8x256xf32>
    %c0_21 = arith.constant 0 : index
    %c3 = arith.constant 3 : index
    %c0_22 = arith.constant 0 : index
    %c0_23 = arith.constant 0 : index
    %46 = vector.load %arg3[%c0_21, %c3, %c0_22, %c0_23] : memref<1x5x8x256xf32, #tpu.memory_space<vmem>>, vector<1x1x8x256xf32>
    %47 = vector.shape_cast %46 : vector<1x1x8x256xf32> to vector<8x256xf32>
    %48 = vector.shape_cast %45 : vector<8x256xf32> to vector<1x1x8x256xf32>
    tpu.vector_store %arg3[%c0_21, %c3, %c0_22, %c0_23], %48 {strides = array<i32>} : memref<1x5x8x256xf32, #tpu.memory_space<vmem>>, vector<1x1x8x256xf32>,
    %c255_i32_24 = arith.constant 255 : i32
    %49 = tpu.dynamic_rotate %28 by %c255_i32_24 dim 1 : vector<8x256xf32>, i32 -> vector<8x256xf32>
    %50 = arith.select %26, %28, %49 : vector<8x256xi1>, vector<8x256xf32>
    %c0_25 = arith.constant 0 : index
    %c4 = arith.constant 4 : index
    %c0_26 = arith.constant 0 : index
    %c0_27 = arith.constant 0 : index
    %51 = vector.load %arg3[%c0_25, %c4, %c0_26, %c0_27] : memref<1x5x8x256xf32, #tpu.memory_space<vmem>>, vector<1x1x8x256xf32>
    %52 = vector.shape_cast %51 : vector<1x1x8x256xf32> to vector<8x256xf32>
    %53 = vector.shape_cast %50 : vector<8x256xf32> to vector<1x1x8x256xf32>
    tpu.vector_store %arg3[%c0_25, %c4, %c0_26, %c0_27], %53 {strides = array<i32>} : memref<1x5x8x256xf32, #tpu.memory_space<vmem>>, vector<1x1x8x256xf32>,
    return
  }
  func.func @transform_0(%arg0: i32, %arg1: i32) -> (i32, i32, i32) {
    %c0_i32 = arith.constant 0 : i32
    %c0_i32_0 = arith.constant 0 : i32
    return %arg0, %arg1, %c0_i32 : i32, i32, i32
  }
  func.func @transform_1(%arg0: i32, %arg1: i32) -> (i32, i32, i32, i32) {
    %c0_i32 = arith.constant 0 : i32
    %c0_i32_0 = arith.constant 0 : i32
    %c0_i32_1 = arith.constant 0 : i32
    return %arg0, %c0_i32, %arg1, %c0_i32_0 : i32, i32, i32, i32
  }
}

</mosaic_0001>

<bundles_post_ra>
// kernel: tpu_custom_call.1
= control target key start
LH: loop header
LB: loop body
LE: loop exit
PB: predicated region body
PF: predicated region fallthrough
CT: control target
= control target key end

     0   :  { %6 = vsyncpa [#allocation3], 0  ;;  %s778_s0 = inlined_call_operand.hbm [shape: f32[2,8,256], index: 0, kind: input, shape index: {}]   ;;  %s779_s1 = inlined_call_operand.hbm [shape: f32[2,5,8,256], index: 1, kind: output, shape index: {}]  }
   0x1   :  { %8 = vsyncpa [#allocation3 + $0x1], 0 }
   0x2   :  { %9 = vsyncpa [#allocation4], 0 }
   0x3   :  { %11 = vsyncpa [#allocation4 + $0x1], 0  ;;  %s579_s6 = smov 0   ;;  %s581_s7 = smov 0  }
   0x4   :  { %s583_s8 = smov 0   ;;  %s585_s9 = smov 0  }
   0x5   :  { %s587_s10 = smov 0   ;;  %s589_s11 = smov 0  }
   0x6 LB: > { %s360_s12 = sadd.s32 4294967295, %s562_s11   ;;  %s361_s13 = sadd.s32 4294967294, %s562_s11   ;;  %s562_s11 = sphi %s589_s11, %s17_s11   ;;  %s558_s10 = sphi %s587_s10, %s796_s10   ;;  %s554_s9 = sphi %s585_s9, %s795_s9   ;;  %s550_s8 = sphi %s583_s8, %s794_s8   ;;  %s546_s7 = sphi %s581_s7, %s793_s7   ;;  %s542_s6 = sphi %s579_s6, %s792_s6  }
   0x7   : > { %s29_s14 = sadd.s32 1, %s558_s10  ;;  %s38_s15 = sadd.s32 1, %s550_s8 }
   0x8   : > { %p31_p0 = scmp.ge.s32.totalorder %s29_s14, 2  ;;  %p45_p1 = scmp.ne.s32.totalorder %s550_s8, %s546_s7 }
   0x9   : > { %p46_p2 = scmp.eq.s32.totalorder %s562_s11, 0  ;;  %p51_p3 = scmp.ne.s32.totalorder %s546_s7, %s542_s6 }
   0xa   : > { %s798_s14 = smov (%p31_p0, %s29_s14), 0  ;;  %p52_p5 = scmp.eq.s32.totalorder %s360_s12, 0 }
   0xb   : > { %p620_p4 = por %p46_p2, %p45_p1  ;;  %s33_s17 = ssub.s32 %s558_s10, %s798_s14 }
   0xc   : > { %p77_p6 = scmp.eq.s32.totalorder %s360_s12, 1  ;;  %p36_p7 = scmp.eq.s32.totalorder %s33_s17, 0 }
   0xd   : > { %p626_p8 = por %p52_p5, %p51_p3  ;;  %p83_p10 = scmp.eq.s32.totalorder %s361_s13, 1 }
   0xe   : > { %p630_p9 = por %p77_p6, %p45_p1  ;;  %p363_p12 = scmp.ge.s32.totalorder %s562_s11, 2 }
   0xf   : > { %s635_s20 = scalar_select %p36_p7, %s550_s8, %s38_s15  }
  0x10   : > { %p637_p11 = por %p83_p10, %p51_p3  ;;  %p395_p13 = scmp.lt.s32.totalorder %s562_s11, 2 }
  0x11   : > { %s103_s22 = sand.u32 1, %s550_s8   ;;  %s380_s24 = sshll.u32 %s558_s10, 4 }
  0x12   : > { %s364_s23 = sshll.u32 %s103_s22, 4  ;;  %s114_s27 = scalar_lea.hbm %s778_s0, %s380_s24 }
  0x13   : > { %s107_s28 = scalar_lea.vmem [#allocation2], %s364_s23  ;;  %s116_s30 = sshll.u32 %s114_s27, 4  ;;  %s117_s30 = int_to_ptr.hbm [resolvable:$true] %s116_s30 }
  0x14   : > { %s118_s29 = sshll.u32 %s107_s28, 4  ;;  %p388_p0 = pnand %p395_p13, %p620_p4  ;;  %s119_s29 = int_to_ptr.vmem [resolvable:$true] %s118_s29 }
  0x15   : > { %p367_p1 = scmp.ge.s32.totalorder %s562_s11, 1  ;;  %p123_p2 = scmp.lt.s32.totalorder %s562_s11, 3 }
  0x16   : > { %s104_s2 = scalar_lea.sflag [#allocation3], %s103_s22 }
  0x17   : > { %390 = dma.hbm_to_vmem [thread:$0]  (!%p388_p0), %s117_s30, 256, %s119_s29, %s104_s2  }
  0x18   : > { %p124_p3 = pnand %p367_p1, %p123_p2 }
  0x19   : > { %s653_s3 = sand.u32 (!%p124_p3), 1, %s546_s7  }
  0x1a   : > { %127 = sbr.rel (%p124_p3) target bundleno = 289 (0x121), region = 24  ;;  %s368_s4 = sshll.u32 (!%p124_p3), %s653_s3, 4 }
  0x1b   : > { %s130_s5 = scalar_lea.sflag (!%p124_p3), [#allocation3], %s653_s3  ;;  %s133_s12 = scalar_lea.vmem (!%p124_p3), [#allocation2], %s368_s4 }
  0x1f   : > { %533 = dma.done.wait (%p626_p8), %s130_s5, 256  }
  0x20   : > { %535 = vsyncadd (%p626_p8), %s130_s5, 4294967040  ;;  %s381_s13 = smul.u32 80, %s653_s3  ;;  %v153_v0 = vld [vmem:[%s133_s12] sm:$0xff]  ;;  %s564_s15 = smov 112   ;;  %v154_v1 = vld [vmem:[%s133_s12 + $0x8] sm:$0xff]  ;;  %v155_v2 = vlaneseq }
  0x21   : > { %198 = vrot.lane.b32.xlu1 %v153_v0, %s564_s15  ;;  %s565_s17 = smov 16   ;;  %s566_s18 = smov 127  }
  0x22   : > { %s662_s16 = scalar_lea.vmem [#allocation5], %s381_s13  ;;  %190 = vrot.lane.b32.xlu0 %v153_v0, %s565_s17  ;;  %v668_v3 = vand.u32 127, %v155_v2  ;;  %s567_s22 = smov 1  }
  0x23   : > { %369 = vst [vmem:[%s662_s16 + $0x10] sm:$0xff] %v153_v0  ;;  %s382_s23 = smul.u32 80, %s554_s9  ;;  %s270_s27 = sshll.u32 %s662_s16, 4  ;;  %s271_s27 = int_to_ptr.vmem [resolvable:$true] %s270_s27 }
  0x24   : > { %370 = vst [vmem:[%s662_s16 + $0x18] sm:$0xff] %v154_v1  ;;  %v157_v6 = vadd.s32 128, %v668_v3  ;;  %vm202_vm0 = vcmp.lt.s32.totalorder %v668_v3, 112  ;;  %vm182_vm1 = vcmp.lt.s32.totalorder %v668_v3, 16  ;;  %v162_v17 = vand.u32 15, %v668_v3  ;;  %s256_s28 = scalar_lea.sflag [#allocation4], %s653_s3 }
  0x25   : > { %vm211_vm3 = vcmp.lt.s32.totalorder %v668_v3, 1  ;;  %vm225_vm6 = vcmp.lt.s32.totalorder %v668_v3, 127  ;;  %s269_s26 = scalar_lea.hbm %s779_s1, %s382_s23  ;;  %s500_s5 = scalar_lea.hbm %s779_s1, 160 }
  0x26   : > { %vm185_vm2 = vcmp.ge.s32.totalorder %v157_v6, 240  ;;  %v169_v18 = vand.u32 15, %v157_v6  ;;  %vm681_vm4 = vcmp.eq.s32.totalorder %v162_v17, 0  ;;  %vm700_vm7 = vcmp.eq.s32.totalorder %v162_v17, 15  ;;  %s272_s9 = sshll.u32 %s269_s26, 4  ;;  %s273_s9 = int_to_ptr.hbm [resolvable:$true] %s272_s9 }
  0x27   : > { %s494_s29 = sshra.s32 %s273_s9, 4  ;;  %s495_s29 = int_to_ptr.hbm [resolvable:$true] %s494_s29 }
  0x28   : > { %vm685_vm5 = vcmp.eq.s32.totalorder %v169_v18, 0  ;;  %vm704_vm8 = vcmp.eq.s32.totalorder %v169_v18, 15  ;;  %s496_s30 = scalar_lea.hbm %s495_s29, 80  ;;  %p501_p7 = scmp.lt.s32.totalorder %s495_s29, %s779_s1 }
  0x29   : > { %200 = vrot.lane.b32.xlu1 %v154_v1, %s564_s15  ;;  %p497_p4 = scmp.ne.s32.totalorder %s495_s29, %s496_s30  ;;  %p502_p8 = scmp.lt.s32.totalorder %s500_s5, %s496_s30 }
  0x2a   : > { %192 = vrot.lane.b32.xlu0 %v154_v1, %s565_s17 }
  0x2b   : > { %p498_p5 = pnand %p497_p4, %p630_p9  ;;  %p503_p10 = por %p502_p8, %p501_p7 }
  0x2d   : > { %p499_p6 = pneg %p498_p5 }
  0x2f   : > { %p504_p13 = pnand %p503_p10, %p499_p6 }
  0x93   : > { %v199_v4 = vpop.permute.xlu1 %198 }
  0x94   : > { %v191_v5 = vpop.permute.xlu0 %190 }
  0x9b   : > { %v201_v7 = vpop.permute.xlu1 %200 }
  0x9c   : > { %v193_v8 = vpop.permute.xlu0 %192  ;;  %v203_v9 = vsel %vm202_vm0, %v199_v4, %v201_v7  ;;  %v204_v10 = vsel %vm202_vm0, %v201_v7, %v199_v4 }
  0x9d   : > { %v194_v11 = vsel %vm182_vm1, %v191_v5, %v193_v8  ;;  %221 = vrot.lane.b32.xlu0 %v203_v9, %s566_s18  ;;  %v206_v12 = vsel %vm185_vm2, %v154_v1, %v204_v10  ;;  %v195_v13 = vsel %vm182_vm1, %v193_v8, %v191_v5 }
  0x9e   : > { %209 = vrot.lane.b32.xlu2 %v194_v11, %s567_s22  ;;  %223 = vrot.lane.b32.xlu1 %v206_v12, %s566_s18  ;;  %v196_v14 = vsel %vm182_vm1, %v153_v0, %v195_v13 }
  0xa5   : > { %235 = vrot.lane.b32.xlu0 %v206_v12, %s567_s22 }
  0xa6   : > { %233 = vrot.lane.b32.xlu2 %v203_v9, %s567_s22  ;;  %244 = vrot.lane.b32.xlu1 %v196_v14, %s566_s18 }
  0xae   : > { %207 = vrot.lane.b32.xlu2 %v196_v14, %s567_s22 }
  0xb6   : > { %246 = vrot.lane.b32.xlu2 %v194_v11, %s566_s18 }
  0xf8   : > { %v210_v15 = vpop.permute.xlu2 %209 }
 0x100   : > { %v234_v16 = vpop.permute.xlu2 %233 }
 0x108   : > { %v208_v21 = vpop.permute.xlu2 %207 }
 0x109   : > { %v212_v22 = vsel %vm211_vm3, %v208_v21, %v210_v15  ;;  %v213_v23 = vsel %vm211_vm3, %v210_v15, %v208_v21 }
 0x10a   : > { %v214_v24 = vsel %vm681_vm4, %v196_v14, %v213_v23  ;;  %v215_v25 = vsel %vm685_vm5, %v194_v11, %v212_v22 }
 0x10b   : > { %216 = vst [vmem:[%s662_s16] sm:$0xff] %v214_v24 }
 0x10c   : > { %217 = vst [vmem:[%s662_s16 + $0x8] sm:$0xff] %v215_v25 }
 0x10f   : > { %v222_v26 = vpop.permute.xlu0 %221 }
 0x110   : > { %v224_v29 = vpop.permute.xlu1 %223  ;;  %v247_v35 = vpop.permute.xlu2 %246 }
 0x111   : > { %v226_v30 = vsel %vm225_vm6, %v222_v26, %v224_v29  ;;  %v227_v31 = vsel %vm225_vm6, %v224_v29, %v222_v26 }
 0x112   : > { %v228_v32 = vsel %vm700_vm7, %v203_v9, %v226_v30  ;;  %v229_v33 = vsel %vm704_vm8, %v206_v12, %v227_v31 }
 0x113   : > { %371 = vst [vmem:[%s662_s16 + $0x20] sm:$0xff] %v228_v32 }
 0x114   : > { %372 = vst [vmem:[%s662_s16 + $0x28] sm:$0xff] %v229_v33 }
 0x117   : > { %v236_v34 = vpop.permute.xlu0 %235 }
 0x118   : > { %v237_v36 = vsel %vm211_vm3, %v234_v16, %v236_v34  ;;  %v238_v37 = vsel %vm211_vm3, %v236_v34, %v234_v16  ;;  %v245_v38 = vpop.permute.xlu1 %244 }
 0x119   : > { %v239_v39 = vsel %vm681_vm4, %v203_v9, %v238_v37  ;;  %v240_v40 = vsel %vm685_vm5, %v206_v12, %v237_v36  ;;  %v248_v41 = vsel %vm225_vm6, %v245_v38, %v247_v35  ;;  %v249_v42 = vsel %vm225_vm6, %v247_v35, %v245_v38 }
 0x11a   : > { %373 = vst [vmem:[%s662_s16 + $0x30] sm:$0xff] %v239_v39  ;;  %v250_v43 = vsel %vm700_vm7, %v196_v14, %v248_v41  ;;  %v251_v44 = vsel %vm704_vm8, %v194_v11, %v249_v42 }
 0x11b   : > { %374 = vst [vmem:[%s662_s16 + $0x38] sm:$0xff] %v240_v40 }
 0x11c   : > { %375 = vst [vmem:[%s662_s16 + $0x40] sm:$0xff] %v250_v43 }
 0x11d   : > { %376 = vst [vmem:[%s662_s16 + $0x48] sm:$0xff] %v251_v44 }
 0x11e   : > { %507 = shalt.err (!%p504_p13)
}
 0x11f   : > { %s568_s3 = smov 256  }
 0x120   : > { %385 = dma.vmem_to_hbm [thread:$0]  (%p630_p9), %s271_s27, 1280, %s273_s9, %s256_s28, %s568_s3, %s568_s3, %s565_s17  }
 0x121 PF: > { %s287_s15 = sand.u32 1, %s542_s6   ;;  %p392_p0 = pnand %p363_p12, %p637_p11 }
 0x122   : > { %s288_s16 = scalar_lea.sflag [#allocation4], %s287_s15 }
 0x123   : > { %p393_p1 = pneg %p392_p0 }
 0x125   : > { %537 = dma.done.wait (%p393_p1), %s288_s16, 1280  }
 0x126   : > { %539 = vsyncadd (%p393_p1), %s288_s16, 4294966016  ;;  %s17_s11 = sadd.s32 1, %s562_s11   ;;  %s792_s6 = smov %s546_s7 }
 0x127   : > { %p14_p2 = scmp.ge.s32.totalorder %s17_s11, 4   ;;  %s793_s7 = smov %s550_s8 }
 0x128   : > { %s794_s8 = smov %s635_s20  ;;  %s795_s9 = smov %s558_s10 }
 0x129   : > { %s796_s10 = smov %s798_s14  ;;  %16 = sbr.rel (!%p14_p2) target bundleno = 6 (0x6), region = 73 }
 0x12e   :  { %294 = vsyncpa [#allocation3], 1 }
 0x12f   :  { %296 = vsyncpa [#allocation3 + $0x1], 1 }
 0x130   :  { %297 = vsyncpa [#allocation4], 1 }
 0x131   :  { %299 = vsyncpa [#allocation4 + $0x1], 1 }

</bundles_post_ra>
